<compile_context>
chip_gen: v5e
topology: v5e:2x2
jax: 0.10.0
libtpu: 0.0.40
codegen_flags: <defaults>
</compile_context>

<pallas_src>
import functools

import jax
import jax.numpy as jnp
from jax.experimental import pallas as pl
from jax.experimental.pallas import tpu as pltpu


def _hash_u32(x):
    """lowbias32 integer hash (Chris Wellons); x is uint32 (scalar or array)."""
    x = x ^ (x >> 16)
    x = x * jnp.uint32(0x7FEB352D)
    x = x ^ (x >> 15)
    x = x * jnp.uint32(0x846CA68B)
    x = x ^ (x >> 16)
    return x


def _ffn_kernel(seed_ref,                                  # scalar-prefetch (SMEM)
                x_ref, w1_ref, b1_ref, w2_ref, b2_ref,     # inputs (VMEM tiles)
                o_ref,                                     # output (VMEM tile)
                acc_ref,                                   # f32 VMEM accumulator
                *, dropout_p, tm, th, total_h):
    i = pl.program_id(0)          # row-tile index
    j = pl.program_id(1)          # hidden-tile (reduction) index

    @pl.when(j == 0)
    def _():
        acc_ref[...] = jnp.zeros_like(acc_ref)

    # ---- first linear chunk: (tm, C) @ (C, th) on the MXU, f32 accumulate ----
    h = jnp.dot(x_ref[...], w1_ref[...], preferred_element_type=jnp.float32)
    h = h + b1_ref[...].astype(jnp.float32)       # (tm, th) + (1, th)
    h = jnp.maximum(h, 0.0)                       # ReLU in accumulator dtype

    # ---- inverted dropout (training semantics), integer-threshold compare ----
    if dropout_p > 0.0:
        row = jax.lax.broadcasted_iota(jnp.int32, h.shape, 0) + i * tm
        col = jax.lax.broadcasted_iota(jnp.int32, h.shape, 1) + j * th
        ctr = (row * total_h + col).astype(jnp.uint32)          # global elem id
        seed_u = seed_ref[0].astype(jnp.uint32)
        bits = _hash_u32(ctr ^ _hash_u32(seed_u * jnp.uint32(0x9E3779B9)))
        thr = jnp.uint32(min(int(round(dropout_p * 4294967296.0)), 4294967295))
        keep = bits >= thr                                       # P(keep) = 1-p
        h = jnp.where(keep, h * jnp.float32(1.0 / (1.0 - dropout_p)),
                      jnp.float32(0.0))

    # ---- second linear chunk: accumulate (tm, th) @ (th, C) into f32 scratch ----
    acc_ref[...] += jnp.dot(h.astype(w2_ref.dtype), w2_ref[...],
                            preferred_element_type=jnp.float32)

    @pl.when(j == pl.num_programs(1) - 1)
    def _():
        out = acc_ref[...] + b2_ref[...].astype(jnp.float32)     # (tm,C)+(1,C)
        o_ref[...] = out.astype(o_ref.dtype)


def feed_forward(x, w1, b1, w2, b2, *, dropout_p=0.0, seed=0,
                 tm=256, th=512, vmem_limit_bytes=None):
    """x: (B, T, C); w1: (C, H); b1: (H,); w2: (H, C); b2: (C,).

    Weights are stored (in_features, out_features); transpose PyTorch
    nn.Linear weights once at parameter-setup time.
    For very large C/H, shrink th and/or pass vmem_limit_bytes explicitly
    (scoped default is 32 MiB on v6e/v7x, 16 MiB on v5e).
    """
    B, T, C = x.shape
    Cin, H = w1.shape
    assert Cin == C and w2.shape == (H, C) and b1.shape == (H,) and b2.shape == (C,)
    M = B * T

    x2 = x.reshape(M, C)
    b1_2 = b1.reshape(1, H)
    b2_2 = b2.reshape(1, C)
    seed_arr = jnp.array([seed], dtype=jnp.int32)

    # Pick the largest row/hidden tiles that divide the problem.
    tm = max(1, min(tm, M))
    while M % tm:
        tm -= 1
    th = max(1, min(th, H))
    while H % th:
        th -= 1

    kernel = functools.partial(_ffn_kernel, dropout_p=float(dropout_p),
                               tm=tm, th=th, total_h=H)

    cp_kwargs = dict(dimension_semantics=("parallel", "arbitrary"))
    if vmem_limit_bytes is not None:
        cp_kwargs["vmem_limit_bytes"] = int(vmem_limit_bytes)

    out2 = pl.pallas_call(
        kernel,
        out_shape=jax.ShapeDtypeStruct((M, C), x.dtype),
        grid_spec=pltpu.PrefetchScalarGridSpec(
            num_scalar_prefetch=1,                    # seed -> SMEM
            grid=(M // tm, H // th),
            in_specs=[
                pl.BlockSpec((tm, C), lambda i, j, seed: (i, 0)),   # x tile
                pl.BlockSpec((C, th), lambda i, j, seed: (0, j)),   # W1 hidden chunk
                pl.BlockSpec((1, th), lambda i, j, seed: (0, j)),   # b1 chunk
                pl.BlockSpec((th, C), lambda i, j, seed: (j, 0)),   # W2 hidden chunk
                pl.BlockSpec((1, C), lambda i, j, seed: (0, 0)),    # b2
            ],
            out_specs=pl.BlockSpec((tm, C), lambda i, j, seed: (i, 0)),
            scratch_shapes=[pltpu.VMEM((tm, C), jnp.float32)],      # f32 accumulator
        ),
        compiler_params=pltpu.CompilerParams(**cp_kwargs),
    )(seed_arr, x2, w1, b1_2, w2, b2_2)

    return out2.reshape(B, T, C)


def feed_forward_ref(x, w1, b1, w2, b2):
    """Pure-JAX reference (dropout disabled / eval mode)."""
    h = jnp.maximum(
        jnp.einsum("btc,ch->bth", x, w1, precision=jax.lax.Precision.HIGHEST) + b1,
        0.0)
    return jnp.einsum("bth,hc->btc", h, w2,
                      precision=jax.lax.Precision.HIGHEST) + b2


if __name__ == "__main__":
    # Small GPT-like shapes, lane-dense: batch=2, seq=8, embed=128, hidden=4*embed.
    B, T, C = 2, 8, 128
    H = 4 * C
    dropout = 0.1

    key = jax.random.PRNGKey(0)
    kx, k1, k2, k3, k4 = jax.random.split(key, 5)

    x = jax.random.normal(kx, (B, T, C), dtype=jnp.float32)

    # Deterministic parameter init (nn.Linear-style bounds), built as (in, out).
    bound1 = 1.0 / (C ** 0.5)
    bound2 = 1.0 / (H ** 0.5)
    w1 = jax.random.uniform(k1, (C, H), jnp.float32, -bound1, bound1)
    b1 = jax.random.uniform(k2, (H,), jnp.float32, -bound1, bound1)
    w2 = jax.random.uniform(k3, (H, C), jnp.float32, -bound2, bound2)
    b2 = jax.random.uniform(k4, (C,), jnp.float32, -bound2, bound2)

    # 1) Correctness with dropout disabled (eval-mode semantics).
    out_nodrop = feed_forward(x, w1, b1, w2, b2, dropout_p=0.0)
    jax.block_until_ready(out_nodrop)
    ref = feed_forward_ref(x, w1, b1, w2, b2)
    assert out_nodrop.shape == (B, T, C)
    assert jnp.allclose(out_nodrop, ref, atol=2e-3, rtol=2e-3), "mismatch vs reference"

    # 2) Training mode: dropout active, deterministic given the seed.
    out_drop1 = feed_forward(x, w1, b1, w2, b2, dropout_p=dropout, seed=42)
    out_drop2 = feed_forward(x, w1, b1, w2, b2, dropout_p=dropout, seed=42)
    jax.block_until_ready((out_drop1, out_drop2))
    assert out_drop1.shape == (B, T, C)
    assert bool(jnp.all(jnp.isfinite(out_drop1)))
    assert jnp.array_equal(out_drop1, out_drop2), "dropout not deterministic per seed"

    print("KERNEL_OK")
</pallas_src>

<mosaic_0001>
module attributes {stable_mosaic.version = 11 : i64} {
  func.func @_ffn_kernel(%arg0: i32, %arg1: i32, %arg2: memref<1xi32, #tpu.memory_space<smem>>, %arg3: memref<16x128xf32, #tpu.memory_space<vmem>>, %arg4: memref<128x512xf32, #tpu.memory_space<vmem>>, %arg5: memref<1x512xf32, #tpu.memory_space<vmem>>, %arg6: memref<512x128xf32, #tpu.memory_space<vmem>>, %arg7: memref<1x128xf32, #tpu.memory_space<vmem>>, %arg8: memref<16x128xf32, #tpu.memory_space<vmem>>, %arg9: memref<16x128xf32, #tpu.memory_space<vmem>>) attributes {dimension_semantics = [#tpu.dimension_semantics<parallel>, #tpu.dimension_semantics<arbitrary>], iteration_bounds = array<i64: 1, 1>, scalar_prefetch = 1 : i64, scratch_operands = 1 : i64, tpu.core_type = #tpu.core_type<tc>, window_params = [{transform_indices = @transform_0, window_bounds = array<i64: 16, 128>}, {transform_indices = @transform_1, window_bounds = array<i64: 128, 512>}, {transform_indices = @transform_2, window_bounds = array<i64: 1, 512>}, {transform_indices = @transform_3, window_bounds = array<i64: 512, 128>}, {pipeline_mode = #tpu.pipeline_mode<synchronous>, transform_indices = @transform_4, window_bounds = array<i64: 1, 128>}, {transform_indices = @transform_5, window_bounds = array<i64: 16, 128>}]} {
    %c0_i32 = arith.constant 0 : i32
    %0 = arith.cmpi eq, %arg1, %c0_i32 : i32
    %1 = arith.extui %0 : i1 to i32
    %c0_i32_0 = arith.constant 0 : i32
    %2 = arith.cmpi ne, %1, %c0_i32_0 : i32
    scf.if %2 {
      %cst_16 = arith.constant 0.000000e+00 : f32
      %19 = vector.broadcast %cst_16 : f32 to vector<16x128xf32>
      %c0_17 = arith.constant 0 : index
      %c0_18 = arith.constant 0 : index
      %20 = vector.load %arg9[%c0_17, %c0_18] : memref<16x128xf32, #tpu.memory_space<vmem>>, vector<16x128xf32>
      tpu.vector_store %arg9[%c0_17, %c0_18], %19 {strides = array<i32>} : memref<16x128xf32, #tpu.memory_space<vmem>>, vector<16x128xf32>,
    } else {
    }
    %c0 = arith.constant 0 : index
    %c0_1 = arith.constant 0 : index
    %3 = vector.load %arg3[%c0, %c0_1] : memref<16x128xf32, #tpu.memory_space<vmem>>, vector<16x128xf32>
    %c0_2 = arith.constant 0 : index
    %c0_3 = arith.constant 0 : index
    %4 = vector.load %arg4[%c0_2, %c0_3] : memref<128x512xf32, #tpu.memory_space<vmem>>, vector<128x512xf32>
    %cst = arith.constant dense<0.000000e+00> : vector<16x512xf32>
    %5 = tpu.matmul %3, %4, %cst {dimension_numbers = #tpu.dot_dimension_numbers<[1], [0], [0], [1], [0, 0, 1, 1], [], []>} : vector<16x128xf32>, vector<128x512xf32>, vector<16x512xf32> -> vector<16x512xf32>
    %c0_4 = arith.constant 0 : index
    %c0_5 = arith.constant 0 : index
    %6 = vector.load %arg5[%c0_4, %c0_5] : memref<1x512xf32, #tpu.memory_space<vmem>>, vector<1x512xf32>
    %7 = vector.broadcast %6 : vector<1x512xf32> to vector<16x512xf32>
    %8 = arith.addf %5, %7 : vector<16x512xf32>
    %cst_6 = arith.constant 0.000000e+00 : f32
    %9 = vector.broadcast %cst_6 : f32 to vector<16x512xf32>
    %10 = arith.maximumf %8, %9 : vector<16x512xf32>
    %c0_7 = arith.constant 0 : index
    %c0_8 = arith.constant 0 : index
    %11 = vector.load %arg9[%c0_7, %c0_8] : memref<16x128xf32, #tpu.memory_space<vmem>>, vector<16x128xf32>
    %c0_9 = arith.constant 0 : index
    %c0_10 = arith.constant 0 : index
    %12 = vector.load %arg6[%c0_9, %c0_10] : memref<512x128xf32, #tpu.memory_space<vmem>>, vector<512x128xf32>
    %cst_11 = arith.constant dense<0.000000e+00> : vector<16x128xf32>
    %13 = tpu.matmul %10, %12, %cst_11 {dimension_numbers = #tpu.dot_dimension_numbers<[1], [0], [0], [1], [0, 0, 1, 1], [], []>} : vector<16x512xf32>, vector<512x128xf32>, vector<16x128xf32> -> vector<16x128xf32>
    %14 = arith.addf %11, %13 : vector<16x128xf32>
    %c0_12 = arith.constant 0 : index
    %c0_13 = arith.constant 0 : index
    %15 = vector.load %arg9[%c0_12, %c0_13] : memref<16x128xf32, #tpu.memory_space<vmem>>, vector<16x128xf32>
    tpu.vector_store %arg9[%c0_12, %c0_13], %14 {strides = array<i32>} : memref<16x128xf32, #tpu.memory_space<vmem>>, vector<16x128xf32>,
    %c0_i32_14 = arith.constant 0 : i32
    %16 = arith.cmpi eq, %arg1, %c0_i32_14 : i32
    %17 = arith.extui %16 : i1 to i32
    %c0_i32_15 = arith.constant 0 : i32
    %18 = arith.cmpi ne, %17, %c0_i32_15 : i32
    scf.if %18 {
      %c0_16 = arith.constant 0 : index
      %c0_17 = arith.constant 0 : index
      %19 = vector.load %arg9[%c0_16, %c0_17] : memref<16x128xf32, #tpu.memory_space<vmem>>, vector<16x128xf32>
      %c0_18 = arith.constant 0 : index
      %c0_19 = arith.constant 0 : index
      %20 = vector.load %arg7[%c0_18, %c0_19] : memref<1x128xf32, #tpu.memory_space<vmem>>, vector<1x128xf32>
      %21 = vector.broadcast %20 : vector<1x128xf32> to vector<16x128xf32>
      %22 = arith.addf %19, %21 : vector<16x128xf32>
      %c0_20 = arith.constant 0 : index
      %c0_21 = arith.constant 0 : index
      %23 = vector.load %arg8[%c0_20, %c0_21] : memref<16x128xf32, #tpu.memory_space<vmem>>, vector<16x128xf32>
      tpu.vector_store %arg8[%c0_20, %c0_21], %22 {strides = array<i32>} : memref<16x128xf32, #tpu.memory_space<vmem>>, vector<16x128xf32>,
    } else {
    }
    return
  }
  func.func @transform_0(%arg0: i32, %arg1: i32, %arg2: memref<1xi32, #tpu.memory_space<smem>>) -> (i32, i32) {
    %c0_i32 = arith.constant 0 : i32
    %c0_i32_0 = arith.constant 0 : i32
    return %arg0, %c0_i32 : i32, i32
  }
  func.func @transform_1(%arg0: i32, %arg1: i32, %arg2: memref<1xi32, #tpu.memory_space<smem>>) -> (i32, i32) {
    %c0_i32 = arith.constant 0 : i32
    %c0_i32_0 = arith.constant 0 : i32
    return %c0_i32, %arg1 : i32, i32
  }
  func.func @transform_2(%arg0: i32, %arg1: i32, %arg2: memref<1xi32, #tpu.memory_space<smem>>) -> (i32, i32) {
    %c0_i32 = arith.constant 0 : i32
    %c0_i32_0 = arith.constant 0 : i32
    return %c0_i32, %arg1 : i32, i32
  }
  func.func @transform_3(%arg0: i32, %arg1: i32, %arg2: memref<1xi32, #tpu.memory_space<smem>>) -> (i32, i32) {
    %c0_i32 = arith.constant 0 : i32
    %c0_i32_0 = arith.constant 0 : i32
    return %arg1, %c0_i32 : i32, i32
  }
  func.func @transform_4(%arg0: i32, %arg1: i32, %arg2: memref<1xi32, #tpu.memory_space<smem>>) -> (i32, i32) {
    %c0_i32 = arith.constant 0 : i32
    %c0_i32_0 = arith.constant 0 : i32
    %c0_i32_1 = arith.constant 0 : i32
    return %c0_i32, %c0_i32_0 : i32, i32
  }
  func.func @transform_5(%arg0: i32, %arg1: i32, %arg2: memref<1xi32, #tpu.memory_space<smem>>) -> (i32, i32) {
    %c0_i32 = arith.constant 0 : i32
    %c0_i32_0 = arith.constant 0 : i32
    return %arg0, %c0_i32 : i32, i32
  }
}

</mosaic_0001>

<bundles_post_ra>
// kernel: tpu_custom_call.1
= control target key start
LH: loop header
LB: loop body
LE: loop exit
PB: predicated region body
PF: predicated region fallthrough
CT: control target
= control target key end

     0   :  { %12 = vsyncpa [#allocation6], 0  ;;  %s671_s0 = inlined_call_operand.<no memory space> [shape: s32[1], index: 0, kind: input, shape index: {}]   ;;  %s672_s1 = inlined_call_operand.hbm [shape: f32[16,128], index: 1, kind: input, shape index: {}]   ;;  %s673_s2 = inlined_call_operand.hbm [shape: f32[128,512], index: 2, kind: input, shape index: {}]   ;;  %s674_s3 = inlined_call_operand.hbm [shape: f32[1,512], index: 3, kind: input, shape index: {}]   ;;  %s675_s4 = inlined_call_operand.hbm [shape: f32[512,128], index: 4, kind: input, shape index: {}]   ;;  %s676_s5 = inlined_call_operand.vmem [shape: f32[1,128], index: 5, kind: input, shape index: {}]   ;;  %s677_s6 = inlined_call_operand.hbm [shape: f32[16,128], index: 6, kind: output, shape index: {}]  }
   0x1   :  { %13 = vsyncpa [#allocation9], 0 }
   0x2   :  { %14 = vsyncpa [#allocation12], 0  ;;  %s33_s22 = sshll.u32 %s673_s2, 4  ;;  %s34_s22 = int_to_ptr.hbm [resolvable:$true] %s33_s22 }
   0x3   :  { %15 = vsyncpa [#allocation7], 0  ;;  %s600_s23 = smov [#allocation8]   ;;  %s20_s27 = sshll.u32 %s672_s1, 4  ;;  %s21_s27 = int_to_ptr.hbm [resolvable:$true] %s20_s27 }
   0x4   :  { %s35_s24 = sshll.u32 %s600_s23, 4  ;;  %s601_s28 = smov 512   ;;  %s36_s24 = int_to_ptr.vmem [resolvable:$true] %s35_s24 }
   0x5   :  { %s602_s29 = smov 32   ;;  %s603_s30 = smov [#allocation5]  }
   0x6   :  { %41 = dma.hbm_to_vmem [thread:$0]  %s34_s22, 8192, %s36_s24, [#allocation9], %s601_s28, %s601_s28, %s602_s29  }
   0x7   :  { %s22_s7 = sshll.u32 %s603_s30, 4  ;;  %s604_s8 = smov 128   ;;  %s23_s7 = int_to_ptr.vmem [resolvable:$true] %s22_s7 }
   0x8   :  { %s605_s9 = smov 8   ;;  %s47_s11 = sshll.u32 %s674_s3, 4  ;;  %s48_s11 = int_to_ptr.hbm [resolvable:$true] %s47_s11 }
   0x9   :  { %28 = dma.hbm_to_vmem [thread:$0]  %s21_s27, 256, %s23_s7, [#allocation6], %s604_s8, %s604_s8, %s605_s9  }
   0xa   :  { %s606_s12 = smov [#allocation10]   ;;  %s57_s15 = sshll.u32 %s675_s4, 4  ;;  %s58_s15 = int_to_ptr.hbm [resolvable:$true] %s57_s15 }
   0xb   :  { %s49_s1 = sshll.u32 %s606_s12, 4  ;;  %s607_s16 = smov [#allocation11]   ;;  %s50_s1 = int_to_ptr.vmem [resolvable:$true] %s49_s1 }
   0xc   :  { %52 = dma.hbm_to_vmem [thread:$0]  %s48_s11, 64, %s50_s1, [#allocation9]  }
   0xd   :  { %s59_s17 = sshll.u32 %s607_s16, 4  ;;  %s60_s17 = int_to_ptr.vmem [resolvable:$true] %s59_s17 }
   0xe   :  { %65 = dma.hbm_to_vmem [thread:$0]  %s58_s15, 8192, %s60_s17, [#allocation12], %s604_s8, %s604_s8, %s605_s9  }
   0xf   :  { %592 = dma.done.wait [#allocation6], 256  }
  0x10   :  { %593 = vsyncadd [#allocation6], 4294967040 }
  0x11   :  { %594 = dma.done.wait [#allocation9], 8256  }
  0x12   :  { %595 = vsyncadd [#allocation9], 4294959040 }
  0x13   :  { %596 = dma.done.wait [#allocation12], 8192  }
  0x14   :  { %597 = vsyncadd [#allocation12], 4294959104  ;;  %v154_v0 = vld [vmem:[#allocation8 + $0x1f0] sm:$0xff]  ;;  %v155_v2 = vld [vmem:[#allocation8 + $0x1f8] sm:$0xff]  ;;  %s608_s18 = smov [#allocation13]   ;;  %s447_s21 = sshll.u32 %s677_s6, 4  ;;  %s448_s21 = int_to_ptr.hbm [resolvable:$true] %s447_s21 }
  0x15   :  { %v150_v1 = vld [vmem:[#allocation8 + $0x1d0] sm:$0xff]  ;;  %212 = vmatpush.msra.mxu2 %v154_v0  ;;  %235 = vmatpush.msra.mxu3 %v155_v2  ;;  %v151_v3 = vld [vmem:[#allocation8 + $0x1d8] sm:$0xff]  ;;  %v152_v7 = vld [vmem:[#allocation8 + $0x1e0] sm:$0xff]  ;;  %s445_s19 = sshll.u32 %s608_s18, 4  ;;  %s446_s19 = int_to_ptr.vmem [resolvable:$true] %s445_s19 }
  0x16   :  { %v146_v4 = vld [vmem:[#allocation8 + $0x1b0] sm:$0xff]  ;;  %v147_v5 = vld [vmem:[#allocation8 + $0x1b8] sm:$0xff]  ;;  %v153_v8 = vld [vmem:[#allocation8 + $0x1e8] sm:$0xff]  ;;  %166 = vmatpush.msra.mxu0 %v152_v7 }
  0x17   :  { %213 = vmatpush.msra.mxu2 %v150_v1  ;;  %236 = vmatpush.msra.mxu3 %v151_v3  ;;  %v142_v6 = vld [vmem:[#allocation8 + $0x190] sm:$0xff]  ;;  %v143_v9 = vld [vmem:[#allocation8 + $0x198] sm:$0xff]  ;;  %v148_v10 = vld [vmem:[#allocation8 + $0x1c0] sm:$0xff] }
  0x18   :  { %189 = vmatpush.msra.mxu1 %v153_v8  ;;  %v149_v11 = vld [vmem:[#allocation8 + $0x1c8] sm:$0xff]  ;;  %v144_v12 = vld [vmem:[#allocation8 + $0x1a0] sm:$0xff]  ;;  %v138_v13 = vld [vmem:[#allocation8 + $0x170] sm:$0xff]  ;;  %167 = vmatpush.msra.mxu0 %v148_v10 }
  0x19   :  { %214 = vmatpush.msra.mxu2 %v146_v4  ;;  %237 = vmatpush.msra.mxu3 %v147_v5  ;;  %v139_v14 = vld [vmem:[#allocation8 + $0x178] sm:$0xff]  ;;  %v145_v15 = vld [vmem:[#allocation8 + $0x1a8] sm:$0xff]  ;;  %v140_v16 = vld [vmem:[#allocation8 + $0x180] sm:$0xff] }
  0x1a   :  { %190 = vmatpush.msra.mxu1 %v149_v11  ;;  %v141_v17 = vld [vmem:[#allocation8 + $0x188] sm:$0xff]  ;;  %v134_v18 = vld [vmem:[#allocation8 + $0x150] sm:$0xff]  ;;  %v135_v19 = vld [vmem:[#allocation8 + $0x158] sm:$0xff]  ;;  %168 = vmatpush.msra.mxu0 %v144_v12 }
  0x1b   :  { %215 = vmatpush.msra.mxu2 %v142_v6  ;;  %238 = vmatpush.msra.mxu3 %v143_v9  ;;  %v136_v20 = vld [vmem:[#allocation8 + $0x160] sm:$0xff]  ;;  %v137_v21 = vld [vmem:[#allocation8 + $0x168] sm:$0xff]  ;;  %v130_v22 = vld [vmem:[#allocation8 + $0x130] sm:$0xff] }
  0x1c   :  { %191 = vmatpush.msra.mxu1 %v145_v15  ;;  %v131_v23 = vld [vmem:[#allocation8 + $0x138] sm:$0xff]  ;;  %169 = vmatpush.msra.mxu0 %v140_v16  ;;  %v132_v24 = vld [vmem:[#allocation8 + $0x140] sm:$0xff]  ;;  %v133_v25 = vld [vmem:[#allocation8 + $0x148] sm:$0xff] }
  0x1d   :  { %216 = vmatpush.msra.mxu2 %v138_v13  ;;  %239 = vmatpush.msra.mxu3 %v139_v14  ;;  %v126_v26 = vld [vmem:[#allocation8 + $0x110] sm:$0xff]  ;;  %v127_v27 = vld [vmem:[#allocation8 + $0x118] sm:$0xff]  ;;  %v128_v28 = vld [vmem:[#allocation8 + $0x120] sm:$0xff] }
  0x1e   :  { %192 = vmatpush.msra.mxu1 %v141_v17  ;;  %170 = vmatpush.msra.mxu0 %v136_v20  ;;  %v129_v29 = vld [vmem:[#allocation8 + $0x128] sm:$0xff]  ;;  %v122_v30 = vld [vmem:[#allocation8 + $0xf0] sm:$0xff]  ;;  %v123_v31 = vld [vmem:[#allocation8 + $0xf8] sm:$0xff] }
  0x1f   :  { %217 = vmatpush.msra.mxu2 %v134_v18  ;;  %240 = vmatpush.msra.mxu3 %v135_v19  ;;  %v124_v32 = vld [vmem:[#allocation8 + $0x100] sm:$0xff]  ;;  %v125_v33 = vld [vmem:[#allocation8 + $0x108] sm:$0xff]  ;;  %v118_v34 = vld [vmem:[#allocation8 + $0xd0] sm:$0xff] }
  0x20   :  { %193 = vmatpush.msra.mxu1 %v137_v21  ;;  %171 = vmatpush.msra.mxu0 %v132_v24  ;;  %v119_v35 = vld [vmem:[#allocation8 + $0xd8] sm:$0xff]  ;;  %v120_v36 = vld [vmem:[#allocation8 + $0xe0] sm:$0xff]  ;;  %v121_v37 = vld [vmem:[#allocation8 + $0xe8] sm:$0xff] }
  0x21   :  { %218 = vmatpush.msra.mxu2 %v130_v22  ;;  %241 = vmatpush.msra.mxu3 %v131_v23  ;;  %v114_v38 = vld [vmem:[#allocation8 + $0xb0] sm:$0xff]  ;;  %v115_v39 = vld [vmem:[#allocation8 + $0xb8] sm:$0xff]  ;;  %v116_v40 = vld [vmem:[#allocation8 + $0xc0] sm:$0xff] }
  0x22   :  { %194 = vmatpush.msra.mxu1 %v133_v25  ;;  %172 = vmatpush.msra.mxu0 %v128_v28  ;;  %v117_v41 = vld [vmem:[#allocation8 + $0xc8] sm:$0xff]  ;;  %v110_v42 = vld [vmem:[#allocation8 + $0x90] sm:$0xff]  ;;  %v111_v43 = vld [vmem:[#allocation8 + $0x98] sm:$0xff] }
  0x23   :  { %219 = vmatpush.msra.mxu2 %v126_v26  ;;  %242 = vmatpush.msra.mxu3 %v127_v27  ;;  %v112_v44 = vld [vmem:[#allocation8 + $0xa0] sm:$0xff]  ;;  %v113_v45 = vld [vmem:[#allocation8 + $0xa8] sm:$0xff]  ;;  %v106_v46 = vld [vmem:[#allocation8 + $0x70] sm:$0xff] }
  0x24   :  { %195 = vmatpush.msra.mxu1 %v129_v29  ;;  %173 = vmatpush.msra.mxu0 %v124_v32  ;;  %v107_v47 = vld [vmem:[#allocation8 + $0x78] sm:$0xff]  ;;  %v108_v48 = vld [vmem:[#allocation8 + $0x80] sm:$0xff]  ;;  %v109_v49 = vld [vmem:[#allocation8 + $0x88] sm:$0xff] }
  0x25   :  { %220 = vmatpush.msra.mxu2 %v122_v30  ;;  %243 = vmatpush.msra.mxu3 %v123_v31  ;;  %v102_v50 = vld [vmem:[#allocation8 + $0x50] sm:$0xff]  ;;  %v103_v51 = vld [vmem:[#allocation8 + $0x58] sm:$0xff]  ;;  %v104_v52 = vld [vmem:[#allocation8 + $0x60] sm:$0xff] }
  0x26   :  { %196 = vmatpush.msra.mxu1 %v125_v33  ;;  %174 = vmatpush.msra.mxu0 %v120_v36  ;;  %v105_v53 = vld [vmem:[#allocation8 + $0x68] sm:$0xff]  ;;  %v98_v54 = vld [vmem:[#allocation8 + $0x30] sm:$0xff]  ;;  %v99_v55 = vld [vmem:[#allocation8 + $0x38] sm:$0xff] }
  0x27   :  { %221 = vmatpush.msra.mxu2 %v118_v34  ;;  %244 = vmatpush.msra.mxu3 %v119_v35  ;;  %v100_v56 = vld [vmem:[#allocation8 + $0x40] sm:$0xff]  ;;  %v101_v57 = vld [vmem:[#allocation8 + $0x48] sm:$0xff]  ;;  %v94_v58 = vld [vmem:[#allocation8 + $0x10] sm:$0xff] }
  0x28   :  { %197 = vmatpush.msra.mxu1 %v121_v37  ;;  %175 = vmatpush.msra.mxu0 %v116_v40  ;;  %v95_v59 = vld [vmem:[#allocation8 + $0x18] sm:$0xff]  ;;  %v90_v60 = vld [vmem:[#allocation5] sm:$0xff]  ;;  %v96_v61 = vld [vmem:[#allocation8 + $0x20] sm:$0xff] }
  0x29   :  { %222 = vmatpush.msra.mxu2 %v114_v38  ;;  %245 = vmatpush.msra.mxu3 %v115_v39  ;;  %v97_v62 = vld [vmem:[#allocation8 + $0x28] sm:$0xff]  ;;  %v315_v63 = vld [vmem:[#allocation11 + $0x178] sm:$0xff]  ;;  %v314_v3 = vld [vmem:[#allocation11 + $0x170] sm:$0xff] }
  0x2a   :  { %198 = vmatpush.msra.mxu1 %v117_v41  ;;  %176 = vmatpush.msra.mxu0 %v112_v44  ;;  %v331_v0 = vld [vmem:[#allocation11 + $0x1f8] sm:$0xff]  ;;  %v93_v2 = vld [vmem:[#allocation8 + $0x8] sm:$0xff]  ;;  %v330_v6 = vld [vmem:[#allocation11 + $0x1f0] sm:$0xff] }
  0x2b   :  { %223 = vmatpush.msra.mxu2 %v110_v42  ;;  %246 = vmatpush.msra.mxu3 %v111_v43  ;;  %v92_v1 = vld [vmem:[#allocation8] sm:$0xff]  ;;  %v313_v7 = vld [vmem:[#allocation11 + $0x168] sm:$0xff]  ;;  %v282_v8 = vld [vmem:[#allocation11 + $0x70] sm:$0xff] }
  0x2c   :  { %199 = vmatpush.msra.mxu1 %v113_v45  ;;  %177 = vmatpush.msra.mxu0 %v108_v48  ;;  %v283_v4 = vld [vmem:[#allocation11 + $0x78] sm:$0xff]  ;;  %v298_v10 = vld [vmem:[#allocation11 + $0xf0] sm:$0xff]  ;;  %v312_v11 = vld [vmem:[#allocation11 + $0x160] sm:$0xff] }
  0x2d   :  { %224 = vmatpush.msra.mxu2 %v106_v46  ;;  %247 = vmatpush.msra.mxu3 %v107_v47  ;;  %v299_v5 = vld [vmem:[#allocation11 + $0xf8] sm:$0xff]  ;;  %v329_v12 = vld [vmem:[#allocation11 + $0x1e8] sm:$0xff]  ;;  %v328_v16 = vld [vmem:[#allocation11 + $0x1e0] sm:$0xff] }
  0x2e   :  { %200 = vmatpush.msra.mxu1 %v109_v49  ;;  %178 = vmatpush.msra.mxu0 %v104_v52  ;;  %v91_v9 = vld [vmem:[#allocation5 + $0x8] sm:$0xff]  ;;  %v281_v13 = vld [vmem:[#allocation11 + $0x68] sm:$0xff]  ;;  %v280_v17 = vld [vmem:[#allocation11 + $0x60] sm:$0xff] }
  0x2f   :  { %225 = vmatpush.msra.mxu2 %v102_v50  ;;  %248 = vmatpush.msra.mxu3 %v103_v51  ;;  %v297_v14 = vld [vmem:[#allocation11 + $0xe8] sm:$0xff]  ;;  %v311_v15 = vld [vmem:[#allocation11 + $0x158] sm:$0xff]  ;;  %v296_v18 = vld [vmem:[#allocation11 + $0xe0] sm:$0xff] }
  0x30   :  { %201 = vmatpush.msra.mxu1 %v105_v53  ;;  %179 = vmatpush.msra.mxu0 %v100_v56  ;;  %v310_v19 = vld [vmem:[#allocation11 + $0x150] sm:$0xff]  ;;  %v327_v20 = vld [vmem:[#allocation11 + $0x1d8] sm:$0xff]  ;;  %v309_v23 = vld [vmem:[#allocation11 + $0x148] sm:$0xff] }
  0x31   :  { %226 = vmatpush.msra.mxu2 %v98_v54  ;;  %249 = vmatpush.msra.mxu3 %v99_v55  ;;  %v279_v21 = vld [vmem:[#allocation11 + $0x58] sm:$0xff]  ;;  %v326_v24 = vld [vmem:[#allocation11 + $0x1d0] sm:$0xff]  ;;  %v308_v27 = vld [vmem:[#allocation11 + $0x140] sm:$0xff] }
  0x32   :  { %202 = vmatpush.msra.mxu1 %v101_v57  ;;  %180 = vmatpush.msra.mxu0 %v96_v61  ;;  %v295_v22 = vld [vmem:[#allocation11 + $0xd8] sm:$0xff]  ;;  %v278_v25 = vld [vmem:[#allocation11 + $0x50] sm:$0xff]  ;;  %v325_v28 = vld [vmem:[#allocation11 + $0x1c8] sm:$0xff] }
  0x33   :  { %227 = vmatpush.msra.mxu2 %v94_v58  ;;  %250 = vmatpush.msra.mxu3 %v95_v59  ;;  %v294_v26 = vld [vmem:[#allocation11 + $0xd0] sm:$0xff]  ;;  %v277_v29 = vld [vmem:[#allocation11 + $0x48] sm:$0xff]  ;;  %v307_v31 = vld [vmem:[#allocation11 + $0x138] sm:$0xff] }
  0x34   :  { %228 = vmatmul.f32.vlgmr.msra.gmra.mxu2 %v90_v60  ;;  %251 = vmatmul.f32.vlgmr.msra.gmra.mxu3 %v90_v60  ;;  %v293_v30 = vld [vmem:[#allocation11 + $0xc8] sm:$0xff]  ;;  %v324_v32 = vld [vmem:[#allocation11 + $0x1c0] sm:$0xff]  ;;  %v306_v35 = vld [vmem:[#allocation11 + $0x130] sm:$0xff] }
  0x35   :  { %203 = vmatpush.msra.mxu1 %v97_v62  ;;  %378 = vmatpush.msrb.mxu2 %v315_v63  ;;  %v276_v33 = vld [vmem:[#allocation11 + $0x40] sm:$0xff]  ;;  %v323_v36 = vld [vmem:[#allocation11 + $0x1b8] sm:$0xff]  ;;  %v305_v39 = vld [vmem:[#allocation11 + $0x128] sm:$0xff] }
  0x36   :  { %401 = vmatpush.msrb.mxu3 %v331_v0  ;;  %181 = vmatpush.msra.mxu0 %v92_v1  ;;  %v292_v34 = vld [vmem:[#allocation11 + $0xc0] sm:$0xff]  ;;  %v275_v37 = vld [vmem:[#allocation11 + $0x38] sm:$0xff]  ;;  %v322_v40 = vld [vmem:[#allocation11 + $0x1b0] sm:$0xff] }
  0x37   :  { %204 = vmatpush.msra.mxu1 %v93_v2  ;;  %182 = vmatmul.f32.vlgmr.msra.gmra.mxu0 %v90_v60  ;;  %v291_v38 = vld [vmem:[#allocation11 + $0xb8] sm:$0xff]  ;;  %v274_v41 = vld [vmem:[#allocation11 + $0x30] sm:$0xff]  ;;  %v304_v43 = vld [vmem:[#allocation11 + $0x120] sm:$0xff] }
  0x38   :  { %205 = vmatmul.f32.vlgmr.msra.gmra.mxu1 %v90_v60  ;;  %379 = vmatpush.msrb.mxu2 %v314_v3  ;;  %v290_v42 = vld [vmem:[#allocation11 + $0xb0] sm:$0xff]  ;;  %v321_v44 = vld [vmem:[#allocation11 + $0x1a8] sm:$0xff]  ;;  %v303_v47 = vld [vmem:[#allocation11 + $0x118] sm:$0xff] }
  0x39   :  { %332 = vmatpush.msrb.mxu0 %v283_v4  ;;  %355 = vmatpush.msrb.mxu1 %v299_v5  ;;  %v273_v45 = vld [vmem:[#allocation11 + $0x28] sm:$0xff]  ;;  %v320_v48 = vld [vmem:[#allocation11 + $0x1a0] sm:$0xff]  ;;  %v302_v51 = vld [vmem:[#allocation11 + $0x110] sm:$0xff] }
  0x3a   :  { %402 = vmatpush.msrb.mxu3 %v330_v6  ;;  %380 = vmatpush.msrb.mxu2 %v313_v7  ;;  %v289_v46 = vld [vmem:[#allocation11 + $0xa8] sm:$0xff]  ;;  %v272_v49 = vld [vmem:[#allocation11 + $0x20] sm:$0xff]  ;;  %v319_v52 = vld [vmem:[#allocation11 + $0x198] sm:$0xff] }
  0x3b   :  { %333 = vmatpush.msrb.mxu0 %v282_v8  ;;  %356 = vmatpush.msrb.mxu1 %v298_v10  ;;  %v288_v50 = vld [vmem:[#allocation11 + $0xa0] sm:$0xff]  ;;  %v271_v53 = vld [vmem:[#allocation11 + $0x18] sm:$0xff]  ;;  %v301_v55 = vld [vmem:[#allocation11 + $0x108] sm:$0xff] }
  0x3c   :  { %231 = vmatmul.f32.gmra.mxu2 %v91_v9  ;;  %254 = vmatmul.f32.gmra.mxu3 %v91_v9  ;;  %v287_v54 = vld [vmem:[#allocation11 + $0x98] sm:$0xff]  ;;  %v318_v56 = vld [vmem:[#allocation11 + $0x190] sm:$0xff]  ;;  %v300_v59 = vld [vmem:[#allocation11 + $0x100] sm:$0xff] }
  0x3d   :  { %381 = vmatpush.msrb.mxu2 %v312_v11  ;;  %403 = vmatpush.msrb.mxu3 %v329_v12  ;;  %v270_v57 = vld [vmem:[#allocation11 + $0x10] sm:$0xff]  ;;  %v317_v60 = vld [vmem:[#allocation11 + $0x188] sm:$0xff]  ;;  %v316_v63 = vld [vmem:[#allocation11 + $0x180] sm:$0xff] }
  0x3e   :  { %334 = vmatpush.msrb.mxu0 %v281_v13  ;;  %357 = vmatpush.msrb.mxu1 %v297_v14  ;;  %v286_v58 = vld [vmem:[#allocation11 + $0x90] sm:$0xff]  ;;  %v269_v61 = vld [vmem:[#allocation11 + $0x8] sm:$0xff]  ;;  %v268_v0 = vld [vmem:[#allocation11] sm:$0xff] }
  0x3f   :  { %382 = vmatpush.msrb.mxu2 %v311_v15  ;;  %185 = vmatmul.f32.gmra.mxu0 %v91_v9  ;;  %v285_v62 = vld [vmem:[#allocation11 + $0x88] sm:$0xff]  ;;  %v284_v1 = vld [vmem:[#allocation11 + $0x80] sm:$0xff]  ;;  %v156_v2 = vld [vmem:[#allocation10] sm:$0xf] }
  0x40   :  { %208 = vmatmul.f32.gmra.mxu1 %v91_v9  ;;  %404 = vmatpush.msrb.mxu3 %v328_v16  ;;  %v158_v3 = vperm.slane %v156_v2, 0  ;;  %v159_v4 = vperm.slane %v156_v2, 1  ;;  %v160_v5 = vperm.slane %v156_v2, 2  ;;  %v161_v6 = vperm.slane %v156_v2, 3 }
  0x41   :  { %335 = vmatpush.msrb.mxu0 %v280_v17  ;;  %358 = vmatpush.msrb.mxu1 %v296_v18 }
  0x42   :  { %383 = vmatpush.msrb.mxu2 %v310_v19  ;;  %405 = vmatpush.msrb.mxu3 %v327_v20 }
  0x43   :  { %336 = vmatpush.msrb.mxu0 %v279_v21  ;;  %359 = vmatpush.msrb.mxu1 %v295_v22 }
  0x44   :  { %384 = vmatpush.msrb.mxu2 %v309_v23  ;;  %406 = vmatpush.msrb.mxu3 %v326_v24 }
  0x45   :  { %337 = vmatpush.msrb.mxu0 %v278_v25  ;;  %360 = vmatpush.msrb.mxu1 %v294_v26 }
  0x46   :  { %385 = vmatpush.msrb.mxu2 %v308_v27  ;;  %407 = vmatpush.msrb.mxu3 %v325_v28 }
  0x47   :  { %338 = vmatpush.msrb.mxu0 %v277_v29  ;;  %361 = vmatpush.msrb.mxu1 %v293_v30 }
  0x48   :  { %386 = vmatpush.msrb.mxu2 %v307_v31  ;;  %408 = vmatpush.msrb.mxu3 %v324_v32 }
  0x49   :  { %339 = vmatpush.msrb.mxu0 %v276_v33  ;;  %362 = vmatpush.msrb.mxu1 %v292_v34 }
  0x4a   :  { %387 = vmatpush.msrb.mxu2 %v306_v35  ;;  %409 = vmatpush.msrb.mxu3 %v323_v36 }
  0x4b   :  { %340 = vmatpush.msrb.mxu0 %v275_v37  ;;  %363 = vmatpush.msrb.mxu1 %v291_v38  ;;  %v471_v37 = vld [vmem:[%s676_s5] ss:$0 sm:$0xff] }
  0x4c   :  { %388 = vmatpush.msrb.mxu2 %v305_v39  ;;  %410 = vmatpush.msrb.mxu3 %v322_v40 }
  0x4d   :  { %341 = vmatpush.msrb.mxu0 %v274_v41  ;;  %364 = vmatpush.msrb.mxu1 %v290_v42 }
  0x4e   :  { %389 = vmatpush.msrb.mxu2 %v304_v43  ;;  %411 = vmatpush.msrb.mxu3 %v321_v44 }
  0x4f   :  { %342 = vmatpush.msrb.mxu0 %v273_v45  ;;  %365 = vmatpush.msrb.mxu1 %v289_v46 }
  0x50   :  { %390 = vmatpush.msrb.mxu2 %v303_v47  ;;  %412 = vmatpush.msrb.mxu3 %v320_v48 }
  0x51   :  { %343 = vmatpush.msrb.mxu0 %v272_v49  ;;  %366 = vmatpush.msrb.mxu1 %v288_v50 }
  0x52   :  { %391 = vmatpush.msrb.mxu2 %v302_v51  ;;  %413 = vmatpush.msrb.mxu3 %v319_v52 }
  0x53   :  { %344 = vmatpush.msrb.mxu0 %v271_v53  ;;  %367 = vmatpush.msrb.mxu1 %v287_v54 }
  0x54   :  { %392 = vmatpush.msrb.mxu2 %v301_v55  ;;  %414 = vmatpush.msrb.mxu3 %v318_v56 }
  0x55   :  { %345 = vmatpush.msrb.mxu0 %v270_v57  ;;  %368 = vmatpush.msrb.mxu1 %v286_v58 }
  0x56   :  { %393 = vmatpush.msrb.mxu2 %v300_v59  ;;  %415 = vmatpush.msrb.mxu3 %v317_v60 }
  0x57   :  { %346 = vmatpush.msrb.mxu0 %v269_v61  ;;  %369 = vmatpush.msrb.mxu1 %v285_v62 }
  0x58   :  { %416 = vmatpush.msrb.mxu3 %v316_v63 }
  0x59   :  { %347 = vmatpush.msrb.mxu0 %v268_v0  ;;  %370 = vmatpush.msrb.mxu1 %v284_v1 }
  0xb4   :  { %v183_v7 = vpop.f32.mrf.mxu0 }
  0xb5   :  { %v206_v8 = vpop.f32.mrf.mxu1  ;;  %v184_v9 = vadd.f32 %v183_v7, %v158_v3 }
  0xb6   :  { %v207_v10 = vadd.f32 %v206_v8, %v159_v4 }
  0xb7   :  { %v229_v11 = vpop.f32.mrf.mxu2  ;;  %v252_v12 = vpop.f32.mrf.mxu3  ;;  %v258_v15 = vmax.f32 %v184_v9, 0.0 }
  0xb8   :  { %v230_v13 = vadd.f32 %v229_v11, %v160_v5  ;;  %v253_v14 = vadd.f32 %v252_v12, %v161_v6  ;;  %v259_v16 = vmax.f32 %v207_v10, 0.0 }
  0xb9   :  { %348 = vmatmul.f32.vlgmr.msrb.gmra.mxu0 %v258_v15 }
  0xba   :  { %v260_v17 = vmax.f32 %v230_v13, 0.0  ;;  %v261_v18 = vmax.f32 %v253_v14, 0.0  ;;  %371 = vmatmul.f32.vlgmr.msrb.gmra.mxu1 %v259_v16 }
  0xbc   :  { %394 = vmatmul.f32.vlgmr.msrb.gmra.mxu2 %v260_v17  ;;  %417 = vmatmul.f32.vlgmr.msrb.gmra.mxu3 %v261_v18  ;;  %v186_v19 = vpop.f32.mrf.mxu0 }
  0xbd   :  { %v209_v20 = vpop.f32.mrf.mxu1  ;;  %v187_v21 = vadd.f32 %v186_v19, %v158_v3 }
  0xbe   :  { %v210_v22 = vadd.f32 %v209_v20, %v159_v4 }
  0xbf   :  { %v232_v23 = vpop.f32.mrf.mxu2  ;;  %v255_v24 = vpop.f32.mrf.mxu3  ;;  %v262_v27 = vmax.f32 %v187_v21, 0.0 }
  0xc0   :  { %v233_v25 = vadd.f32 %v232_v23, %v160_v5  ;;  %v256_v26 = vadd.f32 %v255_v24, %v161_v6  ;;  %v263_v28 = vmax.f32 %v210_v22, 0.0 }
  0xc1   :  { %351 = vmatmul.f32.gmra.mxu0 %v262_v27 }
  0xc2   :  { %v264_v29 = vmax.f32 %v233_v25, 0.0  ;;  %v265_v30 = vmax.f32 %v256_v26, 0.0  ;;  %374 = vmatmul.f32.gmra.mxu1 %v263_v28 }
  0xc4   :  { %397 = vmatmul.f32.gmra.mxu2 %v264_v29  ;;  %420 = vmatmul.f32.gmra.mxu3 %v265_v30 }
 0x136   :  { %v349_v31 = vpop.f32.mrf.mxu0 }
 0x137   :  { %v372_v32 = vpop.f32.mrf.mxu1 }
 0x138   :  { %v373_v33 = vadd.f32 %v372_v32, %v349_v31 }
 0x13e   :  { %v352_v38 = vpop.f32.mrf.mxu0 }
 0x13f   :  { %v395_v34 = vpop.f32.mrf.mxu2  ;;  %v418_v35 = vpop.f32.mrf.mxu3 }
 0x140   :  { %v396_v36 = vadd.f32 %v395_v34, %v373_v33  ;;  %v375_v39 = vpop.f32.mrf.mxu1 }
 0x141   :  { %v376_v42 = vadd.f32 %v375_v39, %v352_v38 }
 0x142   :  { %v419_v40 = vadd.f32 %v418_v35, %v396_v36 }
 0x144   :  { %v437_v41 = vadd.f32 %v471_v37, %v419_v40 }
 0x146   :  { %439 = vst [vmem:[#allocation13] sm:$0xff] %v437_v41 }
 0x147   :  { %v398_v43 = vpop.f32.mrf.mxu2  ;;  %v421_v44 = vpop.f32.mrf.mxu3 }
 0x148   :  { %v399_v45 = vadd.f32 %v398_v43, %v376_v42 }
 0x14a   :  { %v422_v46 = vadd.f32 %v421_v44, %v399_v45 }
 0x14c   :  { %v438_v47 = vadd.f32 %v471_v37, %v422_v46 }
 0x14e   :  { %440 = vst [vmem:[#allocation13 + $0x8] sm:$0xff] %v438_v47 }
 0x14f   :  { %453 = dma.vmem_to_hbm [thread:$0]  %s446_s19, 256, %s448_s21, [#allocation7], %s604_s8, %s604_s8, %s605_s9  }
 0x150   :  { %598 = dma.done.wait [#allocation7], 256  }
 0x151   :  { %599 = vsyncadd [#allocation7], 4294967040 }
 0x152   :  { %458 = vsyncpa [#allocation6], 1 }
 0x153   :  { %459 = vsyncpa [#allocation9], 1 }
 0x154   :  { %460 = vsyncpa [#allocation12], 1 }
 0x155   :  { %461 = vsyncpa [#allocation7], 1 }

</bundles_post_ra>
